<compile_context>
chip_gen: v6e
topology: v6e:2x2x1
jax: 0.10.0
libtpu: 0.0.40
codegen_flags: <defaults>
</compile_context>

<pallas_src>
import functools

import jax
import jax.numpy as jnp
from jax.experimental import pallas as pl
from jax.experimental.pallas import tpu as pltpu

IN_FEATURES = 10
HIDDEN = 32


def mlp_kernel(xt_ref, w1t_ref, b1_ref, w2_ref, b2_ref, o_ref):
    # xt_ref : (IN, TM)    -- TM-column slab of x^T (batch on lanes)
    # w1t_ref: (HID, IN)   -- W1^T, VMEM resident
    # b1_ref : (HID, 1)    -- VMEM resident, broadcast over lanes
    # w2_ref : (HID, 1)    -- VMEM resident
    # b2_ref : (1,)        -- scalar in SMEM
    # o_ref  : (1, 1, TM)  -- lane-dense output slab
    h = jnp.dot(w1t_ref[...], xt_ref[...],
                preferred_element_type=jnp.float32)          # (HID, TM), MXU
    h = jax.nn.sigmoid(h + b1_ref[...])                      # EUP, f32
    # Second layer (32 -> 1): VPU multiply + sublane reduce, no second MXU op.
    y = jnp.sum(h * w2_ref[...], axis=0, keepdims=True) + b2_ref[0]  # (1, TM)
    o_ref[0] = y.astype(o_ref.dtype)


def _round_up(x, m):
    return ((x + m - 1) // m) * m


@functools.partial(jax.jit, static_argnames=("tm",))
def mlp_forward(x, w1, b1, w2, b2, *, tm=2048):
    """x: (B, 10); w1: (10, 32); b1: (1, 32); w2: (32, 1); b2: (1, 1)."""
    B = x.shape[0]

    # Largest comfortable tile (multiple of 128); amortizes ~0.35us/grid-step
    # while staying tiny vs VMEM even on v7x (a (10, 2048) f32 slab ~ 128 KiB
    # per buffer after sublane padding).
    TM = min(tm, _round_up(max(B, 1), 128))
    B_pad = _round_up(B, TM)
    num_tiles = B_pad // TM

    # Layout plumbing in the wrapper: batch onto the lane axis.
    xt = x.T                                     # (10, B)
    if B_pad != B:
        xt = jnp.pad(xt, ((0, 0), (0, B_pad - B)))
    w1t = w1.T                                   # (32, 10)
    b1c = b1.reshape(HIDDEN, 1)                  # (32, 1)
    w2c = w2.reshape(HIDDEN, 1)                  # (32, 1)
    b2s = b2.reshape(1)                          # (1,)  -> SMEM scalar

    cost = pl.CostEstimate(
        flops=2 * B_pad * IN_FEATURES * HIDDEN + 2 * B_pad * HIDDEN,
        transcendentals=B_pad * HIDDEN,
        bytes_accessed=4 * (xt.size + w1t.size + b1c.size + w2c.size + 1 + B_pad),
    )

    out = pl.pallas_call(
        mlp_kernel,
        out_shape=jax.ShapeDtypeStruct((num_tiles, 1, TM), jnp.float32),
        grid=(num_tiles,),
        in_specs=[
            pl.BlockSpec((IN_FEATURES, TM), lambda i: (0, i)),      # x^T slab
            pl.BlockSpec((HIDDEN, IN_FEATURES), lambda i: (0, 0)),  # W1^T resident
            pl.BlockSpec((HIDDEN, 1), lambda i: (0, 0)),            # b1 resident
            pl.BlockSpec((HIDDEN, 1), lambda i: (0, 0)),            # w2 resident
            pl.BlockSpec(memory_space=pltpu.MemorySpace.SMEM),      # b2 scalar
        ],
        out_specs=pl.BlockSpec((1, 1, TM), lambda i: (i, 0, 0)),
        compiler_params=pltpu.CompilerParams(
            dimension_semantics=("parallel",),
        ),
        cost_estimate=cost,
    )(xt, w1t, b1c, w2c, b2s)

    # out[i, 0, j] is the result for batch row i*TM + j.
    return out.reshape(B_pad, 1)[:B]


def init_params(key):
    # Matches nn.Linear default init: U(-1/sqrt(fan_in), 1/sqrt(fan_in))
    k1, k2, k3, k4 = jax.random.split(key, 4)
    bound1 = 1.0 / jnp.sqrt(10.0)
    bound2 = 1.0 / jnp.sqrt(32.0)
    w1 = jax.random.uniform(k1, (10, 32), jnp.float32, -bound1, bound1)
    b1 = jax.random.uniform(k2, (1, 32), jnp.float32, -bound1, bound1)
    w2 = jax.random.uniform(k3, (32, 1), jnp.float32, -bound2, bound2)
    b2 = jax.random.uniform(k4, (1, 1), jnp.float32, -bound2, bound2)
    return w1, b1, w2, b2


if __name__ == "__main__":
    key = jax.random.PRNGKey(0)
    k_x, k_p = jax.random.split(key)

    B = 8
    x = jax.random.normal(k_x, (B, IN_FEATURES), jnp.float32)
    w1, b1, w2, b2 = init_params(k_p)

    out = mlp_forward(x, w1, b1, w2, b2)
    jax.block_until_ready(out)

    # Reference check in plain JAX
    ref = jax.nn.sigmoid(x @ w1 + b1) @ w2 + b2
    assert out.shape == (B, 1)
    assert jnp.allclose(out, ref, atol=1e-5, rtol=1e-5), float(
        jnp.max(jnp.abs(out - ref)))

    print("KERNEL_OK")
</pallas_src>

<mosaic_0001>
module attributes {stable_mosaic.version = 11 : i64} {
  func.func @mlp_kernel(%arg0: i32, %arg1: memref<10x128xf32, #tpu.memory_space<vmem>>, %arg2: memref<32x10xf32, #tpu.memory_space<vmem>>, %arg3: memref<32x1xf32, #tpu.memory_space<vmem>>, %arg4: memref<32x1xf32, #tpu.memory_space<vmem>>, %arg5: memref<1xf32, #tpu.memory_space<smem>>, %arg6: memref<1x1x128xf32, #tpu.memory_space<vmem>>) attributes {dimension_semantics = [#tpu.dimension_semantics<parallel>], iteration_bounds = array<i64: 1>, scalar_prefetch = 0 : i64, scratch_operands = 0 : i64, tpu.core_type = #tpu.core_type<tc>, window_params = [{transform_indices = @transform_0, window_bounds = array<i64: 10, 128>}, {pipeline_mode = #tpu.pipeline_mode<synchronous>, transform_indices = @transform_1, window_bounds = array<i64: 32, 10>}, {pipeline_mode = #tpu.pipeline_mode<synchronous>, transform_indices = @transform_2, window_bounds = array<i64: 32, 1>}, {pipeline_mode = #tpu.pipeline_mode<synchronous>, transform_indices = @transform_3, window_bounds = array<i64: 32, 1>}, {transform_indices = @transform_4, window_bounds = array<i64: 1>}, {transform_indices = @transform_5, window_bounds = array<i64: 1, 1, 128>}]} {
    %c0 = arith.constant 0 : index
    %c0_0 = arith.constant 0 : index
    %0 = vector.load %arg2[%c0, %c0_0] : memref<32x10xf32, #tpu.memory_space<vmem>>, vector<32x10xf32>
    %c0_1 = arith.constant 0 : index
    %c0_2 = arith.constant 0 : index
    %1 = vector.load %arg1[%c0_1, %c0_2] : memref<10x128xf32, #tpu.memory_space<vmem>>, vector<10x128xf32>
    %cst = arith.constant dense<0.000000e+00> : vector<32x128xf32>
    %2 = tpu.matmul %0, %1, %cst {dimension_numbers = #tpu.dot_dimension_numbers<[1], [0], [0], [1], [0, 0, 1, 1], [], []>} : vector<32x10xf32>, vector<10x128xf32>, vector<32x128xf32> -> vector<32x128xf32>
    %c0_3 = arith.constant 0 : index
    %c0_4 = arith.constant 0 : index
    %3 = vector.load %arg3[%c0_3, %c0_4] : memref<32x1xf32, #tpu.memory_space<vmem>>, vector<32x1xf32>
    %4 = vector.broadcast %3 : vector<32x1xf32> to vector<32x128xf32>
    %5 = arith.addf %2, %4 : vector<32x128xf32>
    %6 = arith.negf %5 : vector<32x128xf32>
    %7 = math.exp %6 : vector<32x128xf32>
    %cst_5 = arith.constant 1.000000e+00 : f32
    %8 = vector.broadcast %cst_5 : f32 to vector<32x128xf32>
    %9 = arith.addf %8, %7 : vector<32x128xf32>
    %10 = arith.divf %8, %9 : vector<32x128xf32>
    %c0_6 = arith.constant 0 : index
    %c0_7 = arith.constant 0 : index
    %11 = vector.load %arg4[%c0_6, %c0_7] : memref<32x1xf32, #tpu.memory_space<vmem>>, vector<32x1xf32>
    %12 = vector.broadcast %11 : vector<32x1xf32> to vector<32x128xf32>
    %13 = arith.mulf %10, %12 : vector<32x128xf32>
    %cst_8 = arith.constant dense<0.000000e+00> : vector<128xf32>
    %14 = vector.multi_reduction <add>, %13, %cst_8 [0] : vector<32x128xf32> to vector<128xf32>
    %15 = vector.shape_cast %14 : vector<128xf32> to vector<1x128xf32>
    %c0_9 = arith.constant 0 : index
    %16 = memref.load %arg5[%c0_9] : memref<1xf32, #tpu.memory_space<smem>>
    %17 = vector.broadcast %16 : f32 to vector<1x128xf32>
    %18 = arith.addf %15, %17 : vector<1x128xf32>
    %c0_10 = arith.constant 0 : index
    %c0_11 = arith.constant 0 : index
    %c0_12 = arith.constant 0 : index
    %19 = vector.load %arg6[%c0_10, %c0_11, %c0_12] : memref<1x1x128xf32, #tpu.memory_space<vmem>>, vector<1x1x128xf32>
    %20 = vector.shape_cast %19 : vector<1x1x128xf32> to vector<1x128xf32>
    %21 = vector.shape_cast %18 : vector<1x128xf32> to vector<1x1x128xf32>
    tpu.vector_store %arg6[%c0_10, %c0_11, %c0_12], %21 {strides = array<i32>} : memref<1x1x128xf32, #tpu.memory_space<vmem>>, vector<1x1x128xf32>,
    return
  }
  func.func @transform_0(%arg0: i32) -> (i32, i32) {
    %c0_i32 = arith.constant 0 : i32
    %c0_i32_0 = arith.constant 0 : i32
    return %c0_i32, %arg0 : i32, i32
  }
  func.func @transform_1(%arg0: i32) -> (i32, i32) {
    %c0_i32 = arith.constant 0 : i32
    %c0_i32_0 = arith.constant 0 : i32
    %c0_i32_1 = arith.constant 0 : i32
    return %c0_i32, %c0_i32_0 : i32, i32
  }
  func.func @transform_2(%arg0: i32) -> (i32, i32) {
    %c0_i32 = arith.constant 0 : i32
    %c0_i32_0 = arith.constant 0 : i32
    %c0_i32_1 = arith.constant 0 : i32
    return %c0_i32, %c0_i32_0 : i32, i32
  }
  func.func @transform_3(%arg0: i32) -> (i32, i32) {
    %c0_i32 = arith.constant 0 : i32
    %c0_i32_0 = arith.constant 0 : i32
    %c0_i32_1 = arith.constant 0 : i32
    return %c0_i32, %c0_i32_0 : i32, i32
  }
  func.func @transform_4(%arg0: i32) -> i32 {
    %c0_i32 = arith.constant 0 : i32
    %c0_i32_0 = arith.constant 0 : i32
    return %c0_i32 : i32
  }
  func.func @transform_5(%arg0: i32) -> (i32, i32, i32) {
    %c0_i32 = arith.constant 0 : i32
    %c0_i32_0 = arith.constant 0 : i32
    %c0_i32_1 = arith.constant 0 : i32
    return %arg0, %c0_i32, %c0_i32_0 : i32, i32, i32
  }
}

</mosaic_0001>

<bundles_post_ra>
// kernel: mlp_forward.1
= control target key start
LH: loop header
LB: loop body
LE: loop exit
PB: predicated region body
PF: predicated region fallthrough
CT: control target
= control target key end

     0   :  { %vm64_vm0 = vcmask 1041408   ;;  %v270_v2 = vmov 0   ;;  %vm51_vm1 = vcmask 80896   ;;  %s349_s0 = inlined_call_operand.vmem [shape: f32[10,128], index: 0, kind: input, shape index: {}]   ;;  %s350_s1 = inlined_call_operand.vmem [shape: f32[32,10], index: 1, kind: input, shape index: {}]   ;;  %s351_s2 = inlined_call_operand.vmem [shape: f32[32,1], index: 2, kind: input, shape index: {}]   ;;  %s352_s3 = inlined_call_operand.vmem [shape: f32[32,1], index: 3, kind: input, shape index: {}]   ;;  %s353_s4 = inlined_call_operand.<no memory space> [shape: f32[1], index: 4, kind: input, shape index: {}]   ;;  %s354_s5 = inlined_call_operand.vmem [shape: f32[1,1,128], index: 5, kind: output, shape index: {}]  }
   0x1   :  { %v26_v0 = vld [vmem:[%s349_s0 + $0x8] sm:$0x3]  ;;  %v25_v1 = vld [vmem:[%s349_s0] sm:$0xff]  ;;  %252 = vset.pattern.permute.xlu0 %v270_v2  ;;  %253 = vset.pattern.permute.xlu1 %v270_v2  ;;  %v23_v4 = vld [vmem:[%s350_s1 + $0x10] sm:$0xff]  ;;  %v215_v59 = vstv %s353_s4 }
   0x2   :  { %237 = vmatprep.subr.msk.mxu0 %vm64_vm0, %v26_v0  ;;  %247 = vmatprep.subr.msk.mxu1 %vm64_vm0, %v26_v0  ;;  %v21_v3 = vld [vmem:[%s350_s1] sm:$0xff]  ;;  %v22_v5 = vld [vmem:[%s350_s1 + $0x8] sm:$0xff]  ;;  %v24_v6 = vld [vmem:[%s350_s1 + $0x18] sm:$0xff] }
   0x3   :  { %238 = vmatpush3.msk.msra.mxu0 %vm64_vm0, %v26_v0  ;;  %249 = vmatpush3.msk.msra.mxu1 %vm64_vm0, %v26_v0  ;;  %v27_v7 = vld [vmem:[%s351_s2] sm:$0xff]  ;;  %v29_v8 = vld [vmem:[%s351_s2 + $0x10] sm:$0xff]  ;;  %v28_v9 = vld [vmem:[%s351_s2 + $0x8] sm:$0xff] }
   0x4   :  { %239 = vmatprep.subr.mxu0 %v25_v1  ;;  %248 = vmatprep.subr.mxu1 %v25_v1  ;;  %v30_v10 = vld [vmem:[%s351_s2 + $0x18] sm:$0xff]  ;;  %v177_v11 = vld [vmem:[%s352_s3] sm:$0xff]  ;;  %v178_v12 = vld [vmem:[%s352_s3 + $0x8] sm:$0xff] }
   0x5   :  { %240 = vmatpush3.msra.mxu0 %v25_v1  ;;  %250 = vmatpush3.msra.mxu1 %v25_v1  ;;  %v179_v13 = vld [vmem:[%s352_s3 + $0x10] sm:$0xff]  ;;  %v180_v14 = vld [vmem:[%s352_s3 + $0x18] sm:$0xff] }
   0x6   :  { %241 = vmatprep.mubr.msk.f32.mxu0 %vm51_vm1, %v21_v3  ;;  %244 = vmatprep.mubr.msk.f32.mxu1 %vm51_vm1, %v23_v4 }
   0x7   :  { %242 = vmatmul.mubr.msk.f32.vlgmr.msra.gmra.mxu0 %vm51_vm1, %v22_v5  ;;  %245 = vmatmul.mubr.msk.f32.vlgmr.msra.gmra.mxu1 %vm51_vm1, %v24_v6 }
   0x8   :  { %33 = vperm.xlu0 %252, %v27_v7   ;;  %43 = vperm.xlu1 %253, %v29_v8  }
   0xc   :  { %38 = vperm.xlu0 %252, %v28_v9   ;;  %48 = vperm.xlu1 %253, %v30_v10  }
  0x10   :  { %183 = vperm.xlu0 %252, %v177_v11   ;;  %188 = vperm.xlu1 %253, %v178_v12  }
  0x14   :  { %193 = vperm.xlu0 %252, %v179_v13   ;;  %198 = vperm.xlu1 %253, %v180_v14  }
  0x83   :  { %v34_v15 = vpop.permute.xlu0 %33  ;;  %v44_v16 = vpop.permute.xlu1 %43 }
  0x87   :  { %v39_v17 = vpop.permute.xlu0 %38  ;;  %v49_v18 = vpop.permute.xlu1 %48 }
  0x8b   :  { %v184_v39 = vpop.permute.xlu0 %183  ;;  %v189_v41 = vpop.permute.xlu1 %188 }
  0x8f   :  { %v194_v47 = vpop.permute.xlu0 %193  ;;  %v199_v50 = vpop.permute.xlu1 %198 }
  0xc7   :  { %v243_v19 = vpop.f32.mrf.mxu0  ;;  %v246_v20 = vpop.f32.mrf.mxu1 }
  0xc8   :  { %v140_v21 = vadd.f32 %v243_v19, %v39_v17  ;;  %v150_v22 = vadd.f32 %v246_v20, %v49_v18 }
  0xc9   :  { %v134_v23 = vpop.f32.mrf.mxu0  ;;  %v144_v24 = vpop.f32.mrf.mxu1 }
  0xca   :  { %v228_v25 = vmul.f32 -1.442695, %v140_v21  ;;  %v230_v26 = vmul.f32 -1.442695, %v150_v22  ;;  %v135_v27 = vadd.f32 %v134_v23, %v34_v15  ;;  %v145_v28 = vadd.f32 %v144_v24, %v44_v16 }
  0xcc   :  { %254 = vpow2.f32 %v228_v25  ;;  %v227_v29 = vmul.f32 -1.442695, %v135_v27  ;;  %v229_v30 = vmul.f32 -1.442695, %v145_v28 }
  0xcd   :  { %256 = vpow2.f32 %v230_v26 }
  0xce   :  { %258 = vpow2.f32 %v227_v29 }
  0xcf   :  { %260 = vpow2.f32 %v229_v30 }
  0xd9   :  { %v255_v31 = vpop.eup %254 }
  0xda   :  { %v257_v32 = vpop.eup %256  ;;  %v166_v33 = vadd.f32 1.0, %v255_v31 }
  0xdb   :  { %v259_v34 = vpop.eup %258  ;;  %v168_v36 = vadd.f32 1.0, %v257_v32 }
  0xdc   :  { %v261_v35 = vpop.eup %260  ;;  %262 = vrcp.f32 %v166_v33  ;;  %v165_v37 = vadd.f32 1.0, %v259_v34 }
  0xdd   :  { %v167_v38 = vadd.f32 1.0, %v261_v35 }
  0xde   :  { %264 = vrcp.f32 %v165_v37 }
  0xdf   :  { %266 = vrcp.f32 %v167_v38 }
  0xe0   :  { %268 = vrcp.f32 %v168_v36 }
  0xe9   :  { %v263_v40 = vpop.eup %262 }
  0xea   :  { %v202_v44 = vmul.f32 %v263_v40, %v189_v41 }
  0xeb   :  { %v265_v42 = vpop.eup %264 }
  0xec   :  { %v267_v43 = vpop.eup %266  ;;  %v201_v45 = vmul.f32 %v265_v42, %v184_v39 }
  0xed   :  { %v269_v46 = vpop.eup %268  ;;  %v203_v49 = vmul.f32 %v267_v43, %v194_v47 }
  0xee   :  { %v205_v48 = vadd.f32 %v202_v44, %v201_v45  ;;  %v204_v51 = vmul.f32 %v269_v46, %v199_v50 }
  0xf0   :  { %v206_v52 = vadd.f32 %v205_v48, %v203_v49 }
  0xf2   :  { %v207_v53 = vadd.f32 %v206_v52, %v204_v51 }
  0xf4   :  { %v208_v54 = vrot.slane %v207_v53, 4 }
  0xf6   :  { %v209_v55 = vadd.f32 %v208_v54, %v207_v53 }
  0xf8   :  { %v210_v56 = vrot.slane %v209_v55, 2 }
  0xfa   :  { %v211_v57 = vadd.f32 %v210_v56, %v209_v55 }
  0xfc   :  { %v212_v58 = vrot.slane %v211_v57, 1 }
  0xfe   :  { %v213_v60 = vadd.f32 %v212_v58, %v211_v57 }
 0x100   :  { %v216_v61 = vadd.f32 %v215_v59, %v213_v60 }
 0x102   :  { %217 = vst [vmem:[%s354_s5] sm:$0x1] %v216_v61 }

</bundles_post_ra>
